<compile_context>
chip_gen: v5e
topology: v5e:2x2
jax: 0.10.0
libtpu: 0.0.40
codegen_flags: <defaults>
</compile_context>

<pallas_src>
import jax
import jax.numpy as jnp
from jax.experimental import pallas as pl
from jax.experimental.pallas import tpu as pltpu


def _biaffine_kernel(x_ref, w_ref, b_ref, y_ref, o_ref, t_ref):
    """One (batch, q-tile, n_out, k-tile) grid step.

    x_ref: [1, tq, n_in]    compute dtype
    w_ref: [1, n_in, n_in]  compute dtype (main biaffine weight for this o)
    b_ref: [1, 1, n_in]     compute dtype (bias row -> implicit ones column)
    y_ref: [1, tk, n_in]    compute dtype
    o_ref: [1, 1, tq, tk]   output dtype
    t_ref: [tq, n_in]       compute-dtype VMEM scratch, cached across k-tiles
    """
    ki = pl.program_id(3)

    # t = x @ W_o + bias_o : computed once per (b, q-tile, o), reused for all
    # k-tiles (innermost axis), so the first matmul is not redone per column tile.
    @pl.when(ki == 0)
    def _():
        t = jnp.dot(x_ref[0], w_ref[0], preferred_element_type=jnp.float32)
        t_ref[...] = (t + b_ref[0]).astype(t_ref.dtype)   # cast once, not per k

    y = y_ref[0]                                          # [tk, n_in]
    # s[q, k] = sum_j t[q, j] * y[k, j]  -- contraction on last dims, no transpose.
    s = jax.lax.dot_general(
        t_ref[...], y,
        dimension_numbers=(((1,), (1,)), ((), ())),
        preferred_element_type=jnp.float32)               # [tq, tk], f32 accum
    o_ref[0, 0] = s.astype(o_ref.dtype)


def _biaffine_xla(x, y, weight):
    """Reference / small-shape fallback (matches the torch forward exactly)."""
    x_cat = jnp.concatenate([x, jnp.ones_like(x[..., :1])], axis=-1)
    return jnp.einsum('bxi,oij,byj->boxy', x_cat, weight, y)


def _pick_tile(S, n_in, in_itemsize, out_itemsize, budget_bytes=24 * 1024 * 1024):
    """Largest lane-dense tile dividing S that fits a double-buffered VMEM budget."""
    for t in (512, 256, 128):
        if S % t != 0:
            continue
        per_step = (t * n_in * in_itemsize          # x tile
                    + n_in * n_in * in_itemsize     # w tile
                    + n_in * in_itemsize            # bias row
                    + t * n_in * in_itemsize        # y tile
                    + t * t * out_itemsize)         # output tile
        vmem = 2 * per_step + t * n_in * in_itemsize  # double-buffered + scratch
        if vmem <= budget_bytes:
            return t
    return None


def biaffine(x, y, weight, *, matmul_dtype=None):
    """x, y: [B, S, n_in]; weight: [n_out, n_in+1, n_in].

    Returns [B, n_out, S, S] (n_out axis squeezed when n_out == 1).
    matmul_dtype: optional dtype (e.g. jnp.bfloat16) to run the MXU matmuls in;
    accumulation stays f32 and the output keeps x.dtype.
    """
    B, S, n_in = x.shape
    n_out = weight.shape[0]
    assert weight.shape == (n_out, n_in + 1, n_in)
    assert y.shape == (B, S, n_in)

    compute_dtype = jnp.dtype(matmul_dtype) if matmul_dtype is not None else x.dtype
    in_item = jnp.dtype(compute_dtype).itemsize
    out_item = jnp.dtype(x.dtype).itemsize

    tile = _pick_tile(S, n_in, in_item, out_item) if S >= 128 else None
    use_pallas = (tile is not None) and (n_in >= 128) and (n_in % 128 == 0)
    if not use_pallas:
        # Below this size / off-alignment the kernel loses to XLA: masked partial
        # stores on a narrow output, low MXU utilization, ~0.35us/step overhead.
        out = _biaffine_xla(x, y, weight)
        return jnp.squeeze(out, axis=1) if n_out == 1 else out

    tq = tk = tile
    xc = x.astype(compute_dtype)
    yc = y.astype(compute_dtype)
    w_main = weight[:, :n_in, :].astype(compute_dtype)    # [n_out, n_in, n_in]
    w_bias = weight[:, n_in:, :].astype(compute_dtype)    # [n_out, 1, n_in]

    flops = 2 * B * n_out * (S * n_in * n_in + S * S * n_in)
    bytes_accessed = (2 * B * S * n_in * in_item             # x and y
                      + n_out * (n_in + 1) * n_in * in_item  # weight
                      + B * n_out * S * S * out_item)        # output writeback
    cost = pl.CostEstimate(flops=flops, transcendentals=0,
                           bytes_accessed=bytes_accessed)

    # Grid ordering: axes whose blocks stay fixed are outer of ones that change,
    # so x stays resident across (o, k) and y is only re-fetched on k changes.
    grid = (B, S // tq, n_out, S // tk)

    out = pl.pallas_call(
        _biaffine_kernel,
        out_shape=jax.ShapeDtypeStruct((B, n_out, S, S), x.dtype),
        grid_spec=pltpu.PrefetchScalarGridSpec(
            num_scalar_prefetch=0,
            grid=grid,
            in_specs=[
                pl.BlockSpec((1, tq, n_in), lambda b, q, o, k: (b, q, 0)),
                pl.BlockSpec((1, n_in, n_in), lambda b, q, o, k: (o, 0, 0)),
                pl.BlockSpec((1, 1, n_in), lambda b, q, o, k: (o, 0, 0)),
                pl.BlockSpec((1, tk, n_in), lambda b, q, o, k: (b, k, 0)),
            ],
            out_specs=pl.BlockSpec((1, 1, tq, tk),
                                   lambda b, q, o, k: (b, o, q, k)),
            scratch_shapes=[pltpu.VMEM((tq, n_in), compute_dtype)],
        ),
        compiler_params=pltpu.CompilerParams(
            dimension_semantics=("parallel", "parallel", "arbitrary", "arbitrary")),
        cost_estimate=cost,
    )(xc, w_main, w_bias, yc)

    if n_out == 1:
        out = jnp.squeeze(out, axis=1)                     # torch .squeeze(1)
    return out


if __name__ == "__main__":
    key = jax.random.PRNGKey(0)

    # --- Test 1: the module's own small shapes (B=2, S=8, n_in=32) -----------
    # Falls back to the XLA einsum path (too small for Pallas to win).
    B, S, n_in, n_out = 2, 8, 32, 1
    k1, k2, k3, key = jax.random.split(key, 4)
    x = jax.random.normal(k1, (B, S, n_in), dtype=jnp.float32)
    y = jax.random.normal(k2, (B, S, n_in), dtype=jnp.float32)
    # reset_parameters() zero-inits the weight (trivially-zero output), so use a
    # deterministic random weight of the same shape to exercise the math.
    w = jax.random.normal(k3, (n_out, n_in + 1, n_in), dtype=jnp.float32) * 0.1
    out = jax.block_until_ready(biaffine(x, y, w))
    ref = jnp.squeeze(_biaffine_xla(x, y, w), axis=1)
    assert out.shape == (B, S, S)
    assert jnp.allclose(out, ref, atol=1e-4, rtol=1e-4)

    # --- Test 2: TPU-friendly shapes that take the Pallas kernel path (f32) --
    B, S, n_in, n_out = 2, 256, 128, 2
    k1, k2, k3, key = jax.random.split(key, 4)
    x = jax.random.normal(k1, (B, S, n_in), dtype=jnp.float32)
    y = jax.random.normal(k2, (B, S, n_in), dtype=jnp.float32)
    w = jax.random.normal(k3, (n_out, n_in + 1, n_in), dtype=jnp.float32) * 0.1
    out = jax.block_until_ready(biaffine(x, y, w))
    x_cat = jnp.concatenate([x, jnp.ones_like(x[..., :1])], axis=-1)
    ref = jnp.einsum('bxi,oij,byj->boxy', x_cat, w, y,
                     precision=jax.lax.Precision.HIGHEST)
    assert out.shape == (B, n_out, S, S)
    assert jnp.allclose(out, ref, atol=1e-1, rtol=1e-2)

    # --- Test 3: bf16 MXU path with f32 accumulation --------------------------
    out_bf16 = jax.block_until_ready(biaffine(x, y, w, matmul_dtype=jnp.bfloat16))
    assert out_bf16.shape == (B, n_out, S, S)
    assert out_bf16.dtype == jnp.float32
    assert jnp.allclose(out_bf16, ref, atol=1.0, rtol=5e-2)

    print("KERNEL_OK")
</pallas_src>

<mosaic_0001>
module attributes {stable_mosaic.version = 11 : i64} {
  func.func @_biaffine_kernel(%arg0: i32, %arg1: i32, %arg2: i32, %arg3: i32, %arg4: memref<1x256x128xf32, #tpu.memory_space<vmem>>, %arg5: memref<1x128x128xf32, #tpu.memory_space<vmem>>, %arg6: memref<1x1x128xf32, #tpu.memory_space<vmem>>, %arg7: memref<1x256x128xf32, #tpu.memory_space<vmem>>, %arg8: memref<1x1x256x256xf32, #tpu.memory_space<vmem>>, %arg9: memref<256x128xf32, #tpu.memory_space<vmem>>) attributes {dimension_semantics = [#tpu.dimension_semantics<parallel>, #tpu.dimension_semantics<parallel>, #tpu.dimension_semantics<arbitrary>, #tpu.dimension_semantics<arbitrary>], iteration_bounds = array<i64: 2, 1, 2, 1>, scalar_prefetch = 0 : i64, scratch_operands = 1 : i64, tpu.core_type = #tpu.core_type<tc>, window_params = [{transform_indices = @transform_0, window_bounds = array<i64: 1, 256, 128>}, {transform_indices = @transform_1, window_bounds = array<i64: 1, 128, 128>}, {transform_indices = @transform_2, window_bounds = array<i64: 1, 1, 128>}, {transform_indices = @transform_3, window_bounds = array<i64: 1, 256, 128>}, {transform_indices = @transform_4, window_bounds = array<i64: 1, 1, 256, 256>}]} {
    %c0_i32 = arith.constant 0 : i32
    %0 = arith.cmpi eq, %arg3, %c0_i32 : i32
    %1 = arith.extui %0 : i1 to i32
    %c0_i32_0 = arith.constant 0 : i32
    %2 = arith.cmpi ne, %1, %c0_i32_0 : i32
    scf.if %2 {
      %c0_9 = arith.constant 0 : index
      %c0_10 = arith.constant 0 : index
      %c0_11 = arith.constant 0 : index
      %10 = vector.load %arg4[%c0_9, %c0_10, %c0_11] : memref<1x256x128xf32, #tpu.memory_space<vmem>>, vector<1x256x128xf32>
      %11 = vector.shape_cast %10 : vector<1x256x128xf32> to vector<256x128xf32>
      %c0_12 = arith.constant 0 : index
      %c0_13 = arith.constant 0 : index
      %c0_14 = arith.constant 0 : index
      %12 = vector.load %arg5[%c0_12, %c0_13, %c0_14] : memref<1x128x128xf32, #tpu.memory_space<vmem>>, vector<1x128x128xf32>
      %13 = vector.shape_cast %12 : vector<1x128x128xf32> to vector<128x128xf32>
      %cst_15 = arith.constant dense<0.000000e+00> : vector<256x128xf32>
      %14 = tpu.matmul %11, %13, %cst_15 {dimension_numbers = #tpu.dot_dimension_numbers<[1], [0], [0], [1], [0, 0, 1, 1], [], []>} : vector<256x128xf32>, vector<128x128xf32>, vector<256x128xf32> -> vector<256x128xf32>
      %c0_16 = arith.constant 0 : index
      %c0_17 = arith.constant 0 : index
      %c0_18 = arith.constant 0 : index
      %15 = vector.load %arg6[%c0_16, %c0_17, %c0_18] : memref<1x1x128xf32, #tpu.memory_space<vmem>>, vector<1x1x128xf32>
      %16 = vector.shape_cast %15 : vector<1x1x128xf32> to vector<1x128xf32>
      %17 = vector.broadcast %16 : vector<1x128xf32> to vector<256x128xf32>
      %18 = arith.addf %14, %17 : vector<256x128xf32>
      %c0_19 = arith.constant 0 : index
      %c0_20 = arith.constant 0 : index
      %19 = vector.load %arg9[%c0_19, %c0_20] : memref<256x128xf32, #tpu.memory_space<vmem>>, vector<256x128xf32>
      tpu.vector_store %arg9[%c0_19, %c0_20], %18 {strides = array<i32>} : memref<256x128xf32, #tpu.memory_space<vmem>>, vector<256x128xf32>,
    } else {
    }
    %c0 = arith.constant 0 : index
    %c0_1 = arith.constant 0 : index
    %c0_2 = arith.constant 0 : index
    %3 = vector.load %arg7[%c0, %c0_1, %c0_2] : memref<1x256x128xf32, #tpu.memory_space<vmem>>, vector<1x256x128xf32>
    %4 = vector.shape_cast %3 : vector<1x256x128xf32> to vector<256x128xf32>
    %c0_3 = arith.constant 0 : index
    %c0_4 = arith.constant 0 : index
    %5 = vector.load %arg9[%c0_3, %c0_4] : memref<256x128xf32, #tpu.memory_space<vmem>>, vector<256x128xf32>
    %cst = arith.constant dense<0.000000e+00> : vector<256x256xf32>
    %6 = tpu.matmul %5, %4, %cst {dimension_numbers = #tpu.dot_dimension_numbers<[1], [1], [0], [0], [0, 0, 1, 0], [], []>} : vector<256x128xf32>, vector<256x128xf32>, vector<256x256xf32> -> vector<256x256xf32>
    %c0_5 = arith.constant 0 : index
    %c0_6 = arith.constant 0 : index
    %c0_7 = arith.constant 0 : index
    %c0_8 = arith.constant 0 : index
    %7 = vector.load %arg8[%c0_5, %c0_6, %c0_7, %c0_8] : memref<1x1x256x256xf32, #tpu.memory_space<vmem>>, vector<1x1x256x256xf32>
    %8 = vector.shape_cast %7 : vector<1x1x256x256xf32> to vector<256x256xf32>
    %9 = vector.shape_cast %6 : vector<256x256xf32> to vector<1x1x256x256xf32>
    tpu.vector_store %arg8[%c0_5, %c0_6, %c0_7, %c0_8], %9 {strides = array<i32>} : memref<1x1x256x256xf32, #tpu.memory_space<vmem>>, vector<1x1x256x256xf32>,
    return
  }
  func.func @transform_0(%arg0: i32, %arg1: i32, %arg2: i32, %arg3: i32) -> (i32, i32, i32) {
    %c0_i32 = arith.constant 0 : i32
    %c0_i32_0 = arith.constant 0 : i32
    return %arg0, %arg1, %c0_i32 : i32, i32, i32
  }
  func.func @transform_1(%arg0: i32, %arg1: i32, %arg2: i32, %arg3: i32) -> (i32, i32, i32) {
    %c0_i32 = arith.constant 0 : i32
    %c0_i32_0 = arith.constant 0 : i32
    %c0_i32_1 = arith.constant 0 : i32
    return %arg2, %c0_i32, %c0_i32_0 : i32, i32, i32
  }
  func.func @transform_2(%arg0: i32, %arg1: i32, %arg2: i32, %arg3: i32) -> (i32, i32, i32) {
    %c0_i32 = arith.constant 0 : i32
    %c0_i32_0 = arith.constant 0 : i32
    %c0_i32_1 = arith.constant 0 : i32
    return %arg2, %c0_i32, %c0_i32_0 : i32, i32, i32
  }
  func.func @transform_3(%arg0: i32, %arg1: i32, %arg2: i32, %arg3: i32) -> (i32, i32, i32) {
    %c0_i32 = arith.constant 0 : i32
    %c0_i32_0 = arith.constant 0 : i32
    return %arg0, %arg3, %c0_i32 : i32, i32, i32
  }
  func.func @transform_4(%arg0: i32, %arg1: i32, %arg2: i32, %arg3: i32) -> (i32, i32, i32, i32) {
    %c0_i32 = arith.constant 0 : i32
    return %arg0, %arg2, %arg1, %arg3 : i32, i32, i32, i32
  }
}

</mosaic_0001>

<bundles_post_ra>
// kernel: tpu_custom_call.1
= control target key start
LH: loop header
LB: loop body
LE: loop exit
PB: predicated region body
PF: predicated region fallthrough
CT: control target
= control target key end

     0   :  { %s2176_s0 = inlined_call_operand.hbm [shape: f32[2,256,128], index: 0, kind: input, shape index: {}]   ;;  %s2177_s1 = inlined_call_operand.hbm [shape: f32[2,128,128], index: 1, kind: input, shape index: {}]   ;;  %s2178_s2 = inlined_call_operand.hbm [shape: f32[2,1,128], index: 2, kind: input, shape index: {}]   ;;  %s2179_s3 = inlined_call_operand.hbm [shape: f32[2,256,128], index: 3, kind: input, shape index: {}]   ;;  %s2180_s4 = inlined_call_operand.hbm [shape: f32[2,2,256,256], index: 4, kind: output, shape index: {}]  }
   0x1   :  { %2201 = sst [smem:[#allocation31_spill]] %s2176_s0 }
   0x2   :  { %2202 = sst [smem:[#allocation32_spill]] %s2177_s1 }
   0x3   :  { %2203 = sst [smem:[#allocation33_spill]] %s2178_s2 }
   0x4   :  { %2204 = sst [smem:[#allocation34_spill]] %s2180_s4 }
   0x5   :  { %9 = vsyncpa [#allocation4], 0 }
   0x6   :  { %11 = vsyncpa [#allocation4 + $0x1], 0 }
   0x7   :  { %12 = vsyncpa [#allocation7], 0 }
   0x8   :  { %14 = vsyncpa [#allocation7 + $0x1], 0 }
   0x9   :  { %15 = vsyncpa [#allocation10], 0 }
   0xa   :  { %17 = vsyncpa [#allocation10 + $0x1], 0 }
   0xb   :  { %18 = vsyncpa [#allocation5], 0 }
   0xc   :  { %20 = vsyncpa [#allocation5 + $0x1], 0  ;;  %s1631_s15 = smov 0   ;;  %s1633_s16 = smov 0  }
   0xd   :  { %s1635_s17 = smov 0   ;;  %s1637_s18 = smov 0  }
   0xe   :  { %s1639_s19 = smov 0   ;;  %s1641_s20 = smov 0  }
   0xf   :  { %s1643_s21 = smov 0   ;;  %s1645_s22 = smov 0  }
  0x10   :  { %s1647_s23 = smov 0   ;;  %s1649_s24 = smov 0  }
  0x11   :  { %s1651_s25 = smov 0   ;;  %s1653_s26 = smov 0  }
  0x12   :  { %s1655_s27 = smov 0   ;;  %s1657_s28 = smov 0  }
  0x13 LB: > { %2205 = sst [smem:[#allocation16_spill]] %s1548_s15  ;;  %s1700_s29 = sadd.s32 4294967295, %s1600_s28   ;;  %s1600_s28 = sphi %s1657_s28, %s26_s28   ;;  %s1596_s27 = sphi %s1655_s27, %s2255_s27   ;;  %s1592_s26 = sphi %s1653_s26, %s2254_s26   ;;  %s1588_s25 = sphi %s1651_s25, %s2253_s25   ;;  %s1584_s24 = sphi %s1649_s24, %s2252_s24   ;;  %s1580_s23 = sphi %s1647_s23, %s2251_s23   ;;  %s1576_s22 = sphi %s1645_s22, %s2263_s22   ;;  %s1572_s21 = sphi %s1643_s21, %s2262_s21   ;;  %s1568_s20 = sphi %s1641_s20, %s2261_s20   ;;  %s1564_s19 = sphi %s1639_s19, %s2260_s19   ;;  %s1560_s18 = sphi %s1637_s18, %s2259_s18   ;;  %s1556_s17 = sphi %s1635_s17, %s2248_s17   ;;  %s1552_s16 = sphi %s1633_s16, %s2258_s16   ;;  %s1548_s15 = sphi %s1631_s15, %s2257_s15  }
  0x14   : > { %2206 = sst [smem:[#allocation17_spill]] %s1556_s17  ;;  %s44_s30 = sadd.s32 1, %s1592_s26 }
  0x15   : > { %2207 = sst [smem:[#allocation18_spill]] %s1580_s23  ;;  %p1703_p0 = scmp.ge.s32.totalorder %s44_s30, 2 }
  0x16   : > { %2208 = sst [smem:[#allocation19_spill]] %s1584_s24  ;;  %p69_p1 = scmp.eq.s32.totalorder %s1600_s28, 0 }
  0x17   : > { %2209 = sst [smem:[#allocation20_spill]] %s1588_s25  ;;  %p75_p2 = scmp.eq.s32.totalorder %s1700_s29, 0 }
  0x18   : > { %2210 = sst [smem:[#allocation21_spill]] %s1592_s26  ;;  %s87_s6 = sadd.s32 1, %s1568_s20 }
  0x19   : > { %2211 = sst [smem:[#allocation22_spill]] %s1596_s27  ;;  %s2265_s30 = smov (%p1703_p0, %s44_s30), 0 }
  0x1a   : > { %2212 = sst [smem:[#allocation23_spill]] %s1600_s28  ;;  %p94_p3 = scmp.ne.s32.totalorder %s1568_s20, %s1564_s19 }
  0x1b   : > { %2214 = sst [smem:[#allocation24_spill]] %s2265_s30  ;;  %p100_p4 = scmp.ne.s32.totalorder %s1564_s19, %s1560_s18 }
  0x1c   : > { %s1719_s7 = ssub.s32 %s1592_s26, %s2265_s30  ;;  %p1725_p7 = por %p94_p3, %p69_p1 }
  0x1d   : > { %p85_p6 = scmp.eq.s32.totalorder %s1719_s7, 0  ;;  %p1731_p8 = por %p100_p4, %p75_p2 }
  0x1e   : > { %p2184_p9 = scmp.lt.s32.totalorder %s1600_s28, 4  ;;  %s234_s11 = sand.u32 1, %s1600_s28  }
  0x1f   : > { %s2216_s9 = scalar_select %p1731_p8, 1, 0 }
  0x20   : > { %s1736_s10 = scalar_select %p85_p6, %s1568_s20, %s87_s6  }
  0x21   : > { %s2183_s12 = sand.u32 1, %s1568_s20   ;;  %s1146_s14 = sshll.u32 %s1592_s26, 7 }
  0x22   : > { %2217 = sst [smem:[#allocation25_spill]] %s1736_s10  ;;  %s1128_s13 = sshll.u32 %s2183_s12, 7 }
  0x23   : > { %s2218_s1 = sld [smem:[#allocation32_spill]]  ;;  %s238_s24 = scalar_lea.vmem [#allocation6], %s1128_s13 }
  0x24   : > { %s246_s6 = sshll.u32 %s238_s24, 4  ;;  %p1751_p10 = pnand %p2184_p9, %p1725_p7  ;;  %s247_s6 = int_to_ptr.vmem [resolvable:$true] %s246_s6 }
  0x25   : > { %p1134_p11 = scmp.ge.s32.totalorder %s1600_s28, 1  ;;  %p295_p12 = scmp.lt.s32.totalorder %s1600_s28, 5 }
  0x26   : > { %s2186_s24 = smov 128   ;;  %s2188_s30 = smov 8  }
  0x27   : > { %p1765_p13 = pnand %p1134_p11, %p295_p12  ;;  %s1122_s13 = sadd.s32 4294967294, %s1600_s28  }
  0x28   : > { %p68_p3 = scmp.ne.s32.totalorder %s1580_s23, %s1576_s22  ;;  %p74_p4 = scmp.ne.s32.totalorder %s1576_s22, %s1572_s21 }
  0x29   : > { %s243_s4 = scalar_lea.hbm %s2218_s1, %s1146_s14  ;;  %s61_s14 = sadd.s32 1, %s1580_s23 }
  0x2a   : > { %s244_s25 = sshll.u32 %s243_s4, 4  ;;  %s1757_s4 = scalar_lea.sflag [#allocation7], %s234_s11  ;;  %s245_s25 = int_to_ptr.hbm [resolvable:$true] %s244_s25 }
  0x2b   : > { %1196 = dma.hbm_to_vmem [thread:$0]  (!%p1751_p10), %s245_s25, 2048, %s247_s6, %s1757_s4, %s2186_s24, %s2186_s24, %s2188_s30  }
  0x2c   : > { %s52_s11 = sadd.s32 1, %s1596_s27  ;;  %s173_s18 = sadd.s32 1, %s1556_s17 }
  0x2d   : > { %s2267_s11 = smov (!%p1703_p0, %s52_s11), %s1596_s27  ;;  %p1782_p7 = por %p69_p1, %p68_p3 }
  0x2e   : > { %p54_p6 = scmp.ge.s32.totalorder %s2267_s11, 2  ;;  %p1788_p11 = por %p75_p2, %p74_p4 }
  0x2f   : > { %p183_p0 = scmp.ne.s32.totalorder %s1556_s17, %s1552_s16  ;;  %p189_p12 = scmp.ne.s32.totalorder %s1552_s16, %s1548_s15 }
  0x30   : > { %s2269_s11 = smov (%p54_p6, %s2267_s11), 0  ;;  %p190_p9 = scmp.eq.s32.totalorder %s1122_s13, 3 }
  0x31   : > { %2223 = sst [smem:[#allocation26_spill]] %s2269_s11  ;;  %s56_s21 = ssub.s32 %s1596_s27, %s2269_s11 }
  0x32   : > { %p59_p5 = scmp.eq.s32.totalorder %s56_s21, 0  ;;  %s166_s5 = sor.u32 %s1719_s7, %s56_s21 }
  0x33   : > { %p171_p1 = scmp.eq.s32.totalorder %s166_s5, 0  ;;  %p2224_p3 = scmp.eq.s32.totalorder %s1700_s29, 3 }
  0x34   : > { %s1808_s30 = scalar_select %p59_p5, %s1580_s23, %s61_s14  }
  0x35   : > { %p1803_p8 = por %p2224_p3, %p183_p0  ;;  %p1813_p2 = por %p190_p9, %p189_p12 }
  0x36   : > { %2227 = sst [smem:[#allocation28_spill]] %s1808_s30  ;;  %s1818_s13 = sand.u32 1, %s1580_s23  }
  0x37   : > { %s2225_s24 = scalar_select %p1803_p8, 1, 0 }
  0x38   : > { %s1811_s1 = scalar_select %p171_p1, %s1556_s17, %s173_s18  }
  0x39   : > { %2226 = sst [smem:[#allocation27_spill]] %s2225_s24  ;;  %s1125_s7 = sshll.u32 %s1818_s13, 8 }
  0x3a   : > { %2228 = sst [smem:[#allocation29_spill]] %s1811_s1  ;;  %s1145_s21 = sshll.u32 %s1596_s27, 8 }
  0x3b   : > { %s2229_s10 = scalar_select %p1813_p2, 1, 0 }
  0x3c   : > { %s2231_s0 = sld [smem:[#allocation31_spill]]  ;;  %s214_s30 = scalar_lea.vmem [#allocation3], %s1125_s7 }
  0x3d   : > { %2230 = sst [smem:[#allocation30_spill]] %s2229_s10  ;;  %s224_s18 = sshll.u32 %s214_s30, 4  ;;  %s225_s18 = int_to_ptr.vmem [resolvable:$true] %s224_s18 }
  0x3e   : > { %p2232_p5 = scmp.lt.s32.totalorder %s1600_s28, 4  ;;  %s2234_s2 = sld [smem:[#allocation33_spill]] }
  0x3f   : > { %s2235_s30 = smov 8   ;;  %s2237_s25 = sand.u32 1, %s1568_s20  }
  0x40   : > { %p1829_p9 = pnand %p2232_p5, %p1782_p7  ;;  %s259_s27 = scalar_lea.vmem [#allocation8], %s2237_s25 }
  0x41   : > { %s266_s15 = sshll.u32 %s259_s27, 4  ;;  %s284_s10 = scalar_lea.hbm %s2179_s3, %s1145_s21  ;;  %s267_s15 = int_to_ptr.vmem [resolvable:$true] %s266_s15 }
  0x42   : > { %s221_s14 = scalar_lea.hbm %s2231_s0, %s1145_s21  ;;  %s211_s0 = scalar_lea.sflag [#allocation4], %s1818_s13 }
  0x43   : > { %s222_s1 = sshll.u32 %s221_s14, 4  ;;  %s2236_s14 = smov 128   ;;  %s223_s1 = int_to_ptr.hbm [resolvable:$true] %s222_s1 }
  0x44   : > { %s262_s11 = scalar_lea.hbm %s2234_s2, %s1592_s26  ;;  %s285_s2 = sshll.u32 %s284_s10, 4  ;;  %s286_s2 = int_to_ptr.hbm [resolvable:$true] %s285_s2 }
  0x45   : > { %s264_s5 = sshll.u32 %s262_s11, 4  ;;  %s277_s26 = scalar_lea.vmem [#allocation9], %s1125_s7  ;;  %s265_s5 = int_to_ptr.hbm [resolvable:$true] %s264_s5 }
  0x46   : > { %1193 = dma.hbm_to_vmem [thread:$0]  (!%p1829_p9), %s223_s1, 4096, %s225_s18, %s211_s0, %s2236_s14, %s2236_s14, %s2235_s30  }
  0x47   : > { %1199 = dma.hbm_to_vmem [thread:$0]  (!%p1751_p10), %s265_s5, 16, %s267_s15, %s1757_s4  }
  0x48   : > { %s287_s11 = sshll.u32 %s277_s26, 4  ;;  %s274_s24 = scalar_lea.sflag [#allocation10], %s1818_s13  ;;  %s288_s11 = int_to_ptr.vmem [resolvable:$true] %s287_s11 }
  0x49   : > { %1202 = dma.hbm_to_vmem [thread:$0]  (!%p1829_p9), %s286_s2, 4096, %s288_s11, %s274_s24, %s2236_s14, %s2236_s14, %s2235_s30  }
  0x4a   : > { %299 = sbr.rel (%p1765_p13) target bundleno = 704 (0x2c0), region = 36  ;;  %s301_s0 = sand.u32 (!%p1765_p13), 1, %s1576_s22  }
  0x4b   : > { %s1135_s1 = sshll.u32 (!%p1765_p13), %s301_s0, 8  ;;  %s302_s15 = scalar_lea.sflag (!%p1765_p13), [#allocation4], %s301_s0 }
  0x4c   : > { %s1860_s27 = scalar_lea.vmem (!%p1765_p13), [#allocation3], %s1135_s1 }
  0x4f   : > { %1531 = dma.done.wait (%p1788_p11), %s302_s15, 4096  }
  0x50   : > { %1533 = vsyncadd (%p1788_p11), %s302_s15, 4294963200  ;;  %s311_s23 = sand.u32 1, %s1700_s29   ;;  %s313_s2 = sand.u32 1, %s1564_s19  }
  0x51   : > { %s1136_s26 = sshll.u32 %s313_s2, 7  ;;  %s312_s28 = scalar_lea.sflag [#allocation7], %s311_s23 }
  0x52   : > { %s1868_s12 = scalar_lea.vmem [#allocation6], %s1136_s26  ;;  %p2238_p10 = scmp.ne.s32.totalorder %s2216_s9, 0 }
  0x54   : > { %1535 = dma.done.wait (%p2238_p10), %s312_s28, 2064  }
  0x55   : > { %1537 = vsyncadd (%p2238_p10), %s312_s28, 4294965232  ;;  %s1874_s4 = scalar_lea.vmem [#allocation8], %s313_s2  ;;  %s331_s24 = scalar_lea.sflag [#allocation10], %s301_s0 }
  0x56   : > { %s1876_s8 = scalar_lea.vmem [#allocation9], %s1135_s1 }
  0x57   : > { %1539 = dma.done.wait (%p1788_p11), %s331_s24, 4096  }
  0x58   : > { %1541 = vsyncadd (%p1788_p11), %s331_s24, 4294963200  ;;  %v429_v0 = vld [vmem:[%s1868_s12 + $0x78] sm:$0xff]  ;;  %v428_v1 = vld [vmem:[%s1868_s12 + $0x70] sm:$0xff]  ;;  %s371_s29 = sand.u32 1, %s1552_s16   ;;  %s2239_s13 = sld [smem:[#allocation19_spill]] }
  0x59   : > { %434 = vmatpush.msra.mxu0 %v429_v0  ;;  %v427_v2 = vld [vmem:[%s1868_s12 + $0x68] sm:$0xff]  ;;  %v426_v3 = vld [vmem:[%s1868_s12 + $0x60] sm:$0xff]  ;;  %v425_v4 = vld [vmem:[%s1868_s12 + $0x58] sm:$0xff]  ;;  %s1138_s9 = sshll.u32 %s371_s29, 9  ;;  %s2240_s7 = sld [smem:[#allocation20_spill]] }
  0x5a   : > { %v424_v5 = vld [vmem:[%s1868_s12 + $0x50] sm:$0xff]  ;;  %v423_v6 = vld [vmem:[%s1868_s12 + $0x48] sm:$0xff]  ;;  %v422_v7 = vld [vmem:[%s1868_s12 + $0x40] sm:$0xff]  ;;  %s2025_s6 = scalar_lea.vmem [#allocation11], %s1138_s9  ;;  %s2242_s10 = sld [smem:[#allocation34_spill]] }
  0x5b   : > { %435 = vmatpush.msra.mxu0 %v428_v1  ;;  %v421_v8 = vld [vmem:[%s1868_s12 + $0x38] sm:$0xff]  ;;  %v420_v9 = vld [vmem:[%s1868_s12 + $0x30] sm:$0xff]  ;;  %v419_v10 = vld [vmem:[%s1868_s12 + $0x28] sm:$0xff]  ;;  %s953_s0 = sshll.u32 %s2025_s6, 4  ;;  %s934_s15 = scalar_lea.sflag [#allocation5], %s371_s29  ;;  %s954_s0 = int_to_ptr.vmem [resolvable:$true] %s953_s0 }
  0x5c   : > { %v418_v11 = vld [vmem:[%s1868_s12 + $0x20] sm:$0xff]  ;;  %v417_v12 = vld [vmem:[%s1868_s12 + $0x18] sm:$0xff]  ;;  %v416_v13 = vld [vmem:[%s1868_s12 + $0x10] sm:$0xff] }
  0x5d   : > { %436 = vmatpush.msra.mxu0 %v427_v2  ;;  %v415_v14 = vld [vmem:[%s1868_s12 + $0x8] sm:$0xff]  ;;  %v414_v15 = vld [vmem:[%s1868_s12] sm:$0xff]  ;;  %v384_v18 = vld [vmem:[%s1860_s27 + $0x10] sm:$0xff] }
  0x5e   : > { %v382_v16 = vld [vmem:[%s1860_s27] sm:$0xff]  ;;  %v383_v17 = vld [vmem:[%s1860_s27 + $0x8] sm:$0xff]  ;;  %v385_v19 = vld [vmem:[%s1860_s27 + $0x18] sm:$0xff]  ;;  %s1140_s21 = sshll.u32 %s2239_s13, 6 }
  0x5f   : > { %437 = vmatpush.msra.mxu0 %v426_v3  ;;  %v386_v20 = vld [vmem:[%s1860_s27 + $0x20] sm:$0xff]  ;;  %v593_v23 = vld [vmem:[%s1876_s8 + $0x70] sm:$0xff]  ;;  %v387_v25 = vld [vmem:[%s1860_s27 + $0x28] sm:$0xff]  ;;  %s1141_s18 = sshll.u32 %s2240_s7, 7 }
  0x60   : > { %v594_v21 = vld [vmem:[%s1876_s8 + $0x78] sm:$0xff]  ;;  %v1910_v24 = vld [vmem:[%s1876_s8 + $0xf0] sm:$0xff]  ;;  %v592_v26 = vld [vmem:[%s1876_s8 + $0x68] sm:$0xff]  ;;  %s950_s5 = sadd.s32 %s1141_s18, %s1140_s21  ;;  %s1466_s28 = scalar_lea.hbm %s2242_s10, 2048 }
  0x61   : > { %438 = vmatpush.msra.mxu0 %v425_v4  ;;  %v1905_v22 = vld [vmem:[%s1876_s8 + $0xf8] sm:$0xff]  ;;  %643 = vmatpush.xpose.msra.mxu1 %v594_v21  ;;  %v1916_v27 = vld [vmem:[%s1876_s8 + $0xe8] sm:$0xff]  ;;  %v591_v28 = vld [vmem:[%s1876_s8 + $0x60] sm:$0xff]  ;;  %s1142_s14 = sshll.u32 %s950_s5, 3 }
  0x62   : > { %756 = vmatpush.xpose.msra.mxu2 %v1905_v22  ;;  %1148 = vmatpush.xpose.msra.mxu3 %v594_v21  ;;  %v1921_v29 = vld [vmem:[%s1876_s8 + $0xe0] sm:$0xff]  ;;  %v388_v30 = vld [vmem:[%s1860_s27 + $0x30] sm:$0xff]  ;;  %v590_v31 = vld [vmem:[%s1876_s8 + $0x58] sm:$0xff]  ;;  %s952_s11 = scalar_lea.hbm %s2242_s10, %s1142_s14 }
  0x63   : > { %439 = vmatpush.msra.mxu0 %v424_v5  ;;  %v1927_v32 = vld [vmem:[%s1876_s8 + $0xd8] sm:$0xff]  ;;  %v589_v33 = vld [vmem:[%s1876_s8 + $0x50] sm:$0xff]  ;;  %v588_v36 = vld [vmem:[%s1876_s8 + $0x48] sm:$0xff]  ;;  %s955_s1 = sshll.u32 %s952_s11, 4  ;;  %s956_s1 = int_to_ptr.hbm [resolvable:$true] %s955_s1 }
  0x64   : > { %v1932_v34 = vld [vmem:[%s1876_s8 + $0xd0] sm:$0xff]  ;;  %v1938_v37 = vld [vmem:[%s1876_s8 + $0xc8] sm:$0xff]  ;;  %v587_v38 = vld [vmem:[%s1876_s8 + $0x40] sm:$0xff] }
  0x65   : > { %440 = vmatpush.msra.mxu0 %v423_v6  ;;  %644 = vmatpush.xpose.msra.mxu1 %v593_v23  ;;  %v389_v35 = vld [vmem:[%s1860_s27 + $0x38] sm:$0xff]  ;;  %v1943_v39 = vld [vmem:[%s1876_s8 + $0xc0] sm:$0xff]  ;;  %v584_v46 = vld [vmem:[%s1876_s8 + $0x28] sm:$0xff] }
  0x66   : > { %757 = vmatpush.xpose.msra.mxu2 %v1910_v24  ;;  %1149 = vmatpush.xpose.msra.mxu3 %v593_v23  ;;  %v390_v40 = vld [vmem:[%s1860_s27 + $0x40] sm:$0xff]  ;;  %v585_v43 = vld [vmem:[%s1876_s8 + $0x30] sm:$0xff]  ;;  %v391_v45 = vld [vmem:[%s1860_s27 + $0x48] sm:$0xff] }
  0x67   : > { %441 = vmatpush.msra.mxu0 %v422_v7  ;;  %v586_v41 = vld [vmem:[%s1876_s8 + $0x38] sm:$0xff]  ;;  %v1954_v44 = vld [vmem:[%s1876_s8 + $0xb0] sm:$0xff]  ;;  %v600_v47 = vld [vmem:[%s1876_s8 + $0xa8] sm:$0xff] }
  0x68   : > { %v1949_v42 = vld [vmem:[%s1876_s8 + $0xb8] sm:$0xff]  ;;  %v583_v48 = vld [vmem:[%s1876_s8 + $0x20] sm:$0xff]  ;;  %v392_v50 = vld [vmem:[%s1860_s27 + $0x50] sm:$0xff] }
  0x69   : > { %442 = vmatpush.msra.mxu0 %v421_v8  ;;  %645 = vmatpush.xpose.msra.mxu1 %v592_v26  ;;  %v599_v49 = vld [vmem:[%s1876_s8 + $0xa0] sm:$0xff]  ;;  %v582_v51 = vld [vmem:[%s1876_s8 + $0x18] sm:$0xff]  ;;  %v581_v53 = vld [vmem:[%s1876_s8 + $0x10] sm:$0xff] }
  0x6a   : > { %758 = vmatpush.xpose.msra.mxu2 %v1916_v27  ;;  %1150 = vmatpush.xpose.msra.mxu3 %v592_v26  ;;  %v598_v52 = vld [vmem:[%s1876_s8 + $0x98] sm:$0xff]  ;;  %v597_v54 = vld [vmem:[%s1876_s8 + $0x90] sm:$0xff]  ;;  %v580_v56 = vld [vmem:[%s1876_s8 + $0x8] sm:$0xff] }
  0x6b   : > { %443 = vmatpush.msra.mxu0 %v420_v9  ;;  %v393_v55 = vld [vmem:[%s1860_s27 + $0x58] sm:$0xff]  ;;  %v596_v57 = vld [vmem:[%s1876_s8 + $0x88] sm:$0xff]  ;;  %v579_v58 = vld [vmem:[%s1876_s8] sm:$0xff] }
  0x6c   : > { %v595_v59 = vld [vmem:[%s1876_s8 + $0x80] sm:$0xff]  ;;  %v396_v62 = vld [vmem:[%s1860_s27 + $0x70] sm:$0xff]  ;;  %v397_v63 = vld [vmem:[%s1860_s27 + $0x78] sm:$0xff] }
  0x6d   : > { %444 = vmatpush.msra.mxu0 %v419_v10  ;;  %646 = vmatpush.xpose.msra.mxu1 %v591_v28  ;;  %v394_v60 = vld [vmem:[%s1860_s27 + $0x60] sm:$0xff]  ;;  %v395_v61 = vld [vmem:[%s1860_s27 + $0x68] sm:$0xff]  ;;  %v400_v8 = vld [vmem:[%s1860_s27 + $0x90] sm:$0xff] }
  0x6e   : > { %759 = vmatpush.xpose.msra.mxu2 %v1921_v29  ;;  %1151 = vmatpush.xpose.msra.mxu3 %v591_v28  ;;  %v1984_v0 = vld [vmem:[%s1874_s4] ss:$0 sm:$0xff]  ;;  %v399_v5 = vld [vmem:[%s1860_s27 + $0x88] sm:$0xff]  ;;  %v405_v23 = vld [vmem:[%s1860_s27 + $0xb8] sm:$0xff] }
  0x6f   : > { %445 = vmatpush.msra.mxu0 %v418_v11  ;;  %v398_v2 = vld [vmem:[%s1860_s27 + $0x80] sm:$0xff]  ;;  %v401_v11 = vld [vmem:[%s1860_s27 + $0x98] sm:$0xff] }
  0x70   : > { %v406_v26 = vld [vmem:[%s1860_s27 + $0xc0] sm:$0xff] }
  0x71   : > { %446 = vmatpush.msra.mxu0 %v417_v12  ;;  %647 = vmatpush.xpose.msra.mxu1 %v590_v31 }
  0x72   : > { %760 = vmatpush.xpose.msra.mxu2 %v1927_v32  ;;  %1152 = vmatpush.xpose.msra.mxu3 %v590_v31 }
  0x73   : > { %447 = vmatpush.msra.mxu0 %v416_v13 }
  0x75   : > { %448 = vmatpush.msra.mxu0 %v415_v14  ;;  %648 = vmatpush.xpose.msra.mxu1 %v589_v33  ;;  %v402_v14 = vld [vmem:[%s1860_s27 + $0xa0] sm:$0xff] }
  0x76   : > { %761 = vmatpush.xpose.msra.mxu2 %v1932_v34  ;;  %1153 = vmatpush.xpose.msra.mxu3 %v589_v33 }
  0x77   : > { %449 = vmatpush.msra.mxu0 %v414_v15 }
  0x78   : > { %450 = vmatmul.f32.vlgmr.msra.gmra.mxu0 %v382_v16 }
  0x79   : > { %649 = vmatpush.xpose.msra.mxu1 %v588_v36 }
  0x7a   : > { %762 = vmatpush.xpose.msra.mxu2 %v1938_v37  ;;  %1154 = vmatpush.xpose.msra.mxu3 %v588_v36 }
  0x7d   : > { %650 = vmatpush.xpose.msra.mxu1 %v587_v38 }
  0x7e   : > { %763 = vmatpush.xpose.msra.mxu2 %v1943_v39  ;;  %1155 = vmatpush.xpose.msra.mxu3 %v587_v38  ;;  %v410_v38 = vld [vmem:[%s1860_s27 + $0xe0] sm:$0xff] }
  0x80   : > { %453 = vmatmul.f32.gmra.mxu0 %v383_v17  ;;  %v403_v17 = vld [vmem:[%s1860_s27 + $0xa8] sm:$0xff] }
  0x81   : > { %651 = vmatpush.xpose.msra.mxu1 %v586_v41 }
  0x82   : > { %764 = vmatpush.xpose.msra.mxu2 %v1949_v42  ;;  %1156 = vmatpush.xpose.msra.mxu3 %v586_v41  ;;  %v411_v41 = vld [vmem:[%s1860_s27 + $0xe8] sm:$0xff] }
  0x85   : > { %652 = vmatpush.xpose.msra.mxu1 %v585_v43 }
  0x86   : > { %765 = vmatpush.xpose.msra.mxu2 %v1954_v44  ;;  %1157 = vmatpush.xpose.msra.mxu3 %v585_v43 }
  0x88   : > { %456 = vmatmul.f32.gmra.mxu0 %v384_v18 }
  0x89   : > { %653 = vmatpush.xpose.msra.mxu1 %v584_v46 }
  0x8a   : > { %766 = vmatpush.xpose.msra.mxu2 %v600_v47  ;;  %1158 = vmatpush.xpose.msra.mxu3 %v584_v46 }
  0x8d   : > { %654 = vmatpush.xpose.msra.mxu1 %v583_v48 }
  0x8e   : > { %767 = vmatpush.xpose.msra.mxu2 %v599_v49  ;;  %1159 = vmatpush.xpose.msra.mxu3 %v583_v48 }
  0x90   : > { %459 = vmatmul.f32.gmra.mxu0 %v385_v19 }
  0x91   : > { %655 = vmatpush.xpose.msra.mxu1 %v582_v51 }
  0x92   : > { %768 = vmatpush.xpose.msra.mxu2 %v598_v52  ;;  %1160 = vmatpush.xpose.msra.mxu3 %v582_v51 }
  0x95   : > { %656 = vmatpush.xpose.msra.mxu1 %v581_v53 }
  0x96   : > { %769 = vmatpush.xpose.msra.mxu2 %v597_v54  ;;  %1161 = vmatpush.xpose.msra.mxu3 %v581_v53 }
  0x98   : > { %462 = vmatmul.f32.gmra.mxu0 %v386_v20  ;;  %v404_v20 = vld [vmem:[%s1860_s27 + $0xb0] sm:$0xff] }
  0x99   : > { %657 = vmatpush.xpose.msra.mxu1 %v580_v56 }
  0x9a   : > { %770 = vmatpush.xpose.msra.mxu2 %v596_v57  ;;  %1162 = vmatpush.xpose.msra.mxu3 %v580_v56 }
  0x9d   : > { %658 = vmatpush.xpose.msra.mxu1 %v579_v58 }
  0x9e   : > { %771 = vmatpush.xpose.msra.mxu2 %v595_v59  ;;  %1163 = vmatpush.xpose.msra.mxu3 %v579_v58 }
  0xa0   : > { %465 = vmatmul.f32.gmra.mxu0 %v387_v25 }
  0xa2   : > { %1164 = vmatpush.xpose.msrb.mxu3 %v1905_v22 }
  0xa6   : > { %1165 = vmatpush.xpose.msrb.mxu3 %v1910_v24 }
  0xa8   : > { %468 = vmatmul.f32.gmra.mxu0 %v388_v30 }
  0xaa   : > { %1166 = vmatpush.xpose.msrb.mxu3 %v1916_v27 }
  0xae   : > { %1167 = vmatpush.xpose.msrb.mxu3 %v1921_v29  ;;  %v407_v29 = vld [vmem:[%s1860_s27 + $0xc8] sm:$0xff] }
  0xb0   : > { %471 = vmatmul.f32.gmra.mxu0 %v389_v35  ;;  %v409_v35 = vld [vmem:[%s1860_s27 + $0xd8] sm:$0xff] }
  0xb2   : > { %1168 = vmatpush.xpose.msrb.mxu3 %v1927_v32  ;;  %v408_v32 = vld [vmem:[%s1860_s27 + $0xd0] sm:$0xff] }
  0xb6   : > { %1169 = vmatpush.xpose.msrb.mxu3 %v1932_v34 }
  0xb8   : > { %474 = vmatmul.f32.gmra.mxu0 %v390_v40 }
  0xba   : > { %1170 = vmatpush.xpose.msrb.mxu3 %v1938_v37 }
  0xbe   : > { %1171 = vmatpush.xpose.msrb.mxu3 %v1943_v39 }
  0xc0   : > { %477 = vmatmul.f32.gmra.mxu0 %v391_v45 }
  0xc2   : > { %1172 = vmatpush.xpose.msrb.mxu3 %v1949_v42 }
  0xc6   : > { %1173 = vmatpush.xpose.msrb.mxu3 %v1954_v44  ;;  %v412_v44 = vld [vmem:[%s1860_s27 + $0xf0] sm:$0xff] }
  0xc8   : > { %480 = vmatmul.f32.gmra.mxu0 %v392_v50 }
  0xca   : > { %1174 = vmatpush.xpose.msrb.mxu3 %v600_v47  ;;  %v413_v47 = vld [vmem:[%s1860_s27 + $0xf8] sm:$0xff]  ;;  %s1460_s27 = sshra.s32 %s956_s1, 4  ;;  %s1461_s27 = int_to_ptr.hbm [resolvable:$true] %s1460_s27 }
  0xcb   : > { %s1462_s23 = scalar_lea.hbm %s1461_s27, 512  ;;  %p1467_p7 = scmp.lt.s32.totalorder %s1461_s27, %s2242_s10 }
  0xcc   : > { %p1463_p13 = scmp.ne.s32.totalorder %s1461_s27, %s1462_s23  ;;  %p1468_p11 = scmp.lt.s32.totalorder %s1466_s28, %s1462_s23 }
  0xce   : > { %1175 = vmatpush.xpose.msrb.mxu3 %v599_v49  ;;  %p1464_p4 = pnand %p1463_p13, %p1803_p8  ;;  %p1469_p0 = por %p1468_p11, %p1467_p7 }
  0xd0   : > { %483 = vmatmul.f32.gmra.mxu0 %v393_v55  ;;  %p1465_p6 = pneg %p1464_p4 }
  0xd2   : > { %1176 = vmatpush.xpose.msrb.mxu3 %v598_v52  ;;  %p1470_p12 = pnand %p1469_p0, %p1465_p6 }
  0xd6   : > { %1177 = vmatpush.xpose.msrb.mxu3 %v597_v54 }
  0xd8   : > { %486 = vmatmul.f32.gmra.mxu0 %v394_v60 }
  0xda   : > { %1178 = vmatpush.xpose.msrb.mxu3 %v596_v57 }
  0xde   : > { %1179 = vmatpush.xpose.msrb.mxu3 %v595_v59 }
  0xe0   : > { %489 = vmatmul.f32.gmra.mxu0 %v395_v61 }
  0xe8   : > { %492 = vmatmul.f32.gmra.mxu0 %v396_v62 }
  0xf0   : > { %495 = vmatmul.f32.gmra.mxu0 %v397_v63 }
  0xf5   : > { %v451_v1 = vpop.f32.mrf.mxu0 }
  0xf6   : > { %v452_v3 = vadd.f32 %v1984_v0, %v451_v1 }
  0xf8   : > { %498 = vmatmul.f32.gmra.mxu0 %v398_v2  ;;  %659 = vmatmul.f32.vlgmr.msra.gmra.mxu1 %v452_v3 }
  0xf9   : > { %772 = vmatmul.f32.vlgmr.msra.gmra.mxu2 %v452_v3 }
  0xfd   : > { %v454_v4 = vpop.f32.mrf.mxu0 }
  0xfe   : > { %v455_v6 = vadd.f32 %v1984_v0, %v454_v4 }
 0x100   : > { %501 = vmatmul.f32.gmra.mxu0 %v399_v5  ;;  %662 = vmatmul.f32.gmra.mxu1 %v455_v6 }
 0x101   : > { %775 = vmatmul.f32.gmra.mxu2 %v455_v6 }
 0x105   : > { %v457_v7 = vpop.f32.mrf.mxu0 }
 0x106   : > { %v458_v9 = vadd.f32 %v1984_v0, %v457_v7 }
 0x108   : > { %504 = vmatmul.f32.gmra.mxu0 %v400_v8  ;;  %665 = vmatmul.f32.gmra.mxu1 %v458_v9 }
 0x109   : > { %778 = vmatmul.f32.gmra.mxu2 %v458_v9 }
 0x10d   : > { %v460_v10 = vpop.f32.mrf.mxu0 }
 0x10e   : > { %v461_v12 = vadd.f32 %v1984_v0, %v460_v10 }
 0x110   : > { %507 = vmatmul.f32.gmra.mxu0 %v401_v11  ;;  %668 = vmatmul.f32.gmra.mxu1 %v461_v12 }
 0x111   : > { %781 = vmatmul.f32.gmra.mxu2 %v461_v12 }
 0x115   : > { %v463_v13 = vpop.f32.mrf.mxu0 }
 0x116   : > { %v464_v15 = vadd.f32 %v1984_v0, %v463_v13 }
 0x118   : > { %510 = vmatmul.f32.gmra.mxu0 %v402_v14  ;;  %671 = vmatmul.f32.gmra.mxu1 %v464_v15 }
 0x119   : > { %784 = vmatmul.f32.gmra.mxu2 %v464_v15 }
 0x11d   : > { %v466_v16 = vpop.f32.mrf.mxu0 }
 0x11e   : > { %v467_v18 = vadd.f32 %v1984_v0, %v466_v16 }
 0x120   : > { %513 = vmatmul.f32.gmra.mxu0 %v403_v17  ;;  %674 = vmatmul.f32.gmra.mxu1 %v467_v18 }
 0x121   : > { %787 = vmatmul.f32.gmra.mxu2 %v467_v18 }
 0x125   : > { %v469_v19 = vpop.f32.mrf.mxu0 }
 0x126   : > { %v470_v21 = vadd.f32 %v1984_v0, %v469_v19 }
 0x128   : > { %516 = vmatmul.f32.gmra.mxu0 %v404_v20  ;;  %677 = vmatmul.f32.gmra.mxu1 %v470_v21 }
 0x129   : > { %790 = vmatmul.f32.gmra.mxu2 %v470_v21 }
 0x12d   : > { %v472_v22 = vpop.f32.mrf.mxu0 }
 0x12e   : > { %v473_v24 = vadd.f32 %v1984_v0, %v472_v22 }
 0x130   : > { %519 = vmatmul.f32.gmra.mxu0 %v405_v23  ;;  %680 = vmatmul.f32.gmra.mxu1 %v473_v24 }
 0x131   : > { %793 = vmatmul.f32.gmra.mxu2 %v473_v24 }
 0x135   : > { %v475_v25 = vpop.f32.mrf.mxu0 }
 0x136   : > { %v476_v27 = vadd.f32 %v1984_v0, %v475_v25 }
 0x138   : > { %522 = vmatmul.f32.gmra.mxu0 %v406_v26  ;;  %683 = vmatmul.f32.gmra.mxu1 %v476_v27 }
 0x139   : > { %796 = vmatmul.f32.gmra.mxu2 %v476_v27 }
 0x13d   : > { %v478_v28 = vpop.f32.mrf.mxu0 }
 0x13e   : > { %v479_v30 = vadd.f32 %v1984_v0, %v478_v28 }
 0x140   : > { %525 = vmatmul.f32.gmra.mxu0 %v407_v29  ;;  %686 = vmatmul.f32.gmra.mxu1 %v479_v30 }
 0x141   : > { %799 = vmatmul.f32.gmra.mxu2 %v479_v30 }
 0x145   : > { %v481_v31 = vpop.f32.mrf.mxu0 }
 0x146   : > { %v482_v33 = vadd.f32 %v1984_v0, %v481_v31 }
 0x148   : > { %528 = vmatmul.f32.gmra.mxu0 %v408_v32  ;;  %689 = vmatmul.f32.gmra.mxu1 %v482_v33 }
 0x149   : > { %802 = vmatmul.f32.gmra.mxu2 %v482_v33 }
 0x14d   : > { %v484_v34 = vpop.f32.mrf.mxu0 }
 0x14e   : > { %v485_v36 = vadd.f32 %v1984_v0, %v484_v34 }
 0x150   : > { %531 = vmatmul.f32.gmra.mxu0 %v409_v35  ;;  %692 = vmatmul.f32.gmra.mxu1 %v485_v36 }
 0x151   : > { %805 = vmatmul.f32.gmra.mxu2 %v485_v36 }
 0x155   : > { %v487_v37 = vpop.f32.mrf.mxu0 }
 0x156   : > { %v488_v39 = vadd.f32 %v1984_v0, %v487_v37 }
 0x158   : > { %534 = vmatmul.f32.gmra.mxu0 %v410_v38  ;;  %695 = vmatmul.f32.gmra.mxu1 %v488_v39 }
 0x159   : > { %808 = vmatmul.f32.gmra.mxu2 %v488_v39 }
 0x15d   : > { %v490_v40 = vpop.f32.mrf.mxu0 }
 0x15e   : > { %v491_v42 = vadd.f32 %v1984_v0, %v490_v40 }
 0x160   : > { %537 = vmatmul.f32.gmra.mxu0 %v411_v41  ;;  %698 = vmatmul.f32.gmra.mxu1 %v491_v42 }
 0x161   : > { %811 = vmatmul.f32.gmra.mxu2 %v491_v42 }
 0x165   : > { %v493_v43 = vpop.f32.mrf.mxu0 }
 0x166   : > { %v494_v45 = vadd.f32 %v1984_v0, %v493_v43 }
 0x168   : > { %540 = vmatmul.f32.gmra.mxu0 %v412_v44  ;;  %701 = vmatmul.f32.gmra.mxu1 %v494_v45 }
 0x169   : > { %814 = vmatmul.f32.gmra.mxu2 %v494_v45 }
 0x16d   : > { %v496_v46 = vpop.f32.mrf.mxu0 }
 0x16e   : > { %v497_v48 = vadd.f32 %v1984_v0, %v496_v46 }
 0x170   : > { %543 = vmatmul.f32.gmra.mxu0 %v413_v47  ;;  %704 = vmatmul.f32.gmra.mxu1 %v497_v48 }
 0x171   : > { %817 = vmatmul.f32.gmra.mxu2 %v497_v48 }
 0x175   : > { %v499_v49 = vpop.f32.mrf.mxu0  ;;  %v660_v50 = vpop.f32.mrf.mxu1 }
 0x176   : > { %v500_v51 = vadd.f32 %v1984_v0, %v499_v49  ;;  %869 = vst [vmem:[%s2025_s6] sm:$0xff] %v660_v50 }
 0x178   : > { %707 = vmatmul.f32.gmra.mxu1 %v500_v51 }
 0x179   : > { %820 = vmatmul.f32.gmra.mxu2 %v500_v51 }
 0x17c   : > { %v773_v52 = vpop.f32.mrf.mxu2 }
 0x17d   : > { %870 = vst [vmem:[%s2025_s6 + $0x8] sm:$0xff] %v773_v52  ;;  %v502_v53 = vpop.f32.mrf.mxu0  ;;  %v663_v54 = vpop.f32.mrf.mxu1 }
 0x17e   : > { %v503_v55 = vadd.f32 %v1984_v0, %v502_v53  ;;  %871 = vst [vmem:[%s2025_s6 + $0x10] sm:$0xff] %v663_v54 }
 0x180   : > { %710 = vmatmul.f32.gmra.mxu1 %v503_v55 }
 0x181   : > { %823 = vmatmul.f32.gmra.mxu2 %v503_v55 }
 0x184   : > { %v776_v56 = vpop.f32.mrf.mxu2 }
 0x185   : > { %872 = vst [vmem:[%s2025_s6 + $0x18] sm:$0xff] %v776_v56  ;;  %v505_v57 = vpop.f32.mrf.mxu0  ;;  %v666_v58 = vpop.f32.mrf.mxu1 }
 0x186   : > { %v506_v59 = vadd.f32 %v1984_v0, %v505_v57  ;;  %873 = vst [vmem:[%s2025_s6 + $0x20] sm:$0xff] %v666_v58 }
 0x188   : > { %713 = vmatmul.f32.gmra.mxu1 %v506_v59 }
 0x189   : > { %826 = vmatmul.f32.gmra.mxu2 %v506_v59 }
 0x18c   : > { %v779_v60 = vpop.f32.mrf.mxu2 }
 0x18d   : > { %874 = vst [vmem:[%s2025_s6 + $0x28] sm:$0xff] %v779_v60  ;;  %v508_v61 = vpop.f32.mrf.mxu0  ;;  %v669_v62 = vpop.f32.mrf.mxu1 }
 0x18e   : > { %v509_v63 = vadd.f32 %v1984_v0, %v508_v61  ;;  %875 = vst [vmem:[%s2025_s6 + $0x30] sm:$0xff] %v669_v62 }
 0x190   : > { %716 = vmatmul.f32.gmra.mxu1 %v509_v63 }
 0x191   : > { %829 = vmatmul.f32.gmra.mxu2 %v509_v63 }
 0x194   : > { %v782_v1 = vpop.f32.mrf.mxu2 }
 0x195   : > { %876 = vst [vmem:[%s2025_s6 + $0x38] sm:$0xff] %v782_v1  ;;  %v511_v2 = vpop.f32.mrf.mxu0  ;;  %v672_v3 = vpop.f32.mrf.mxu1 }
 0x196   : > { %v512_v4 = vadd.f32 %v1984_v0, %v511_v2  ;;  %877 = vst [vmem:[%s2025_s6 + $0x40] sm:$0xff] %v672_v3 }
 0x198   : > { %719 = vmatmul.f32.gmra.mxu1 %v512_v4 }
 0x199   : > { %832 = vmatmul.f32.gmra.mxu2 %v512_v4 }
 0x19c   : > { %v785_v5 = vpop.f32.mrf.mxu2 }
 0x19d   : > { %878 = vst [vmem:[%s2025_s6 + $0x48] sm:$0xff] %v785_v5  ;;  %v514_v6 = vpop.f32.mrf.mxu0  ;;  %v675_v7 = vpop.f32.mrf.mxu1 }
 0x19e   : > { %v515_v8 = vadd.f32 %v1984_v0, %v514_v6  ;;  %879 = vst [vmem:[%s2025_s6 + $0x50] sm:$0xff] %v675_v7 }
 0x1a0   : > { %722 = vmatmul.f32.gmra.mxu1 %v515_v8 }
 0x1a1   : > { %835 = vmatmul.f32.gmra.mxu2 %v515_v8 }
 0x1a4   : > { %v788_v9 = vpop.f32.mrf.mxu2 }
 0x1a5   : > { %880 = vst [vmem:[%s2025_s6 + $0x58] sm:$0xff] %v788_v9  ;;  %v517_v10 = vpop.f32.mrf.mxu0  ;;  %v678_v11 = vpop.f32.mrf.mxu1 }
 0x1a6   : > { %v518_v12 = vadd.f32 %v1984_v0, %v517_v10  ;;  %881 = vst [vmem:[%s2025_s6 + $0x60] sm:$0xff] %v678_v11 }
 0x1a8   : > { %725 = vmatmul.f32.gmra.mxu1 %v518_v12 }
 0x1a9   : > { %838 = vmatmul.f32.gmra.mxu2 %v518_v12 }
 0x1ac   : > { %v791_v13 = vpop.f32.mrf.mxu2 }
 0x1ad   : > { %882 = vst [vmem:[%s2025_s6 + $0x68] sm:$0xff] %v791_v13  ;;  %v520_v14 = vpop.f32.mrf.mxu0  ;;  %v681_v15 = vpop.f32.mrf.mxu1 }
 0x1ae   : > { %v521_v16 = vadd.f32 %v1984_v0, %v520_v14  ;;  %883 = vst [vmem:[%s2025_s6 + $0x70] sm:$0xff] %v681_v15 }
 0x1b0   : > { %728 = vmatmul.f32.vlgmr.msra.gmra.mxu3 %v521_v16 }
 0x1b4   : > { %v794_v17 = vpop.f32.mrf.mxu2 }
 0x1b5   : > { %884 = vst [vmem:[%s2025_s6 + $0x78] sm:$0xff] %v794_v17  ;;  %v523_v18 = vpop.f32.mrf.mxu0  ;;  %v684_v19 = vpop.f32.mrf.mxu1 }
 0x1b6   : > { %v524_v20 = vadd.f32 %v1984_v0, %v523_v18  ;;  %885 = vst [vmem:[%s2025_s6 + $0x80] sm:$0xff] %v684_v19 }
 0x1b8   : > { %731 = vmatmul.f32.gmra.mxu3 %v524_v20 }
 0x1bc   : > { %v797_v21 = vpop.f32.mrf.mxu2 }
 0x1bd   : > { %886 = vst [vmem:[%s2025_s6 + $0x88] sm:$0xff] %v797_v21  ;;  %v526_v22 = vpop.f32.mrf.mxu0  ;;  %v687_v23 = vpop.f32.mrf.mxu1 }
 0x1be   : > { %v527_v24 = vadd.f32 %v1984_v0, %v526_v22  ;;  %887 = vst [vmem:[%s2025_s6 + $0x90] sm:$0xff] %v687_v23 }
 0x1c0   : > { %734 = vmatmul.f32.gmra.mxu3 %v527_v24 }
 0x1c4   : > { %v800_v25 = vpop.f32.mrf.mxu2 }
 0x1c5   : > { %888 = vst [vmem:[%s2025_s6 + $0x98] sm:$0xff] %v800_v25  ;;  %v529_v26 = vpop.f32.mrf.mxu0  ;;  %v690_v27 = vpop.f32.mrf.mxu1 }
 0x1c6   : > { %v530_v28 = vadd.f32 %v1984_v0, %v529_v26  ;;  %889 = vst [vmem:[%s2025_s6 + $0xa0] sm:$0xff] %v690_v27 }
 0x1c8   : > { %737 = vmatmul.f32.gmra.mxu3 %v530_v28 }
 0x1cc   : > { %v803_v29 = vpop.f32.mrf.mxu2 }
 0x1cd   : > { %890 = vst [vmem:[%s2025_s6 + $0xa8] sm:$0xff] %v803_v29  ;;  %v532_v30 = vpop.f32.mrf.mxu0  ;;  %v693_v31 = vpop.f32.mrf.mxu1 }
 0x1ce   : > { %v533_v32 = vadd.f32 %v1984_v0, %v532_v30  ;;  %891 = vst [vmem:[%s2025_s6 + $0xb0] sm:$0xff] %v693_v31 }
 0x1d0   : > { %740 = vmatmul.f32.gmra.mxu3 %v533_v32 }
 0x1d4   : > { %v806_v33 = vpop.f32.mrf.mxu2 }
 0x1d5   : > { %892 = vst [vmem:[%s2025_s6 + $0xb8] sm:$0xff] %v806_v33  ;;  %v535_v34 = vpop.f32.mrf.mxu0  ;;  %v696_v35 = vpop.f32.mrf.mxu1 }
 0x1d6   : > { %v536_v36 = vadd.f32 %v1984_v0, %v535_v34  ;;  %893 = vst [vmem:[%s2025_s6 + $0xc0] sm:$0xff] %v696_v35 }
 0x1d8   : > { %743 = vmatmul.f32.gmra.mxu3 %v536_v36 }
 0x1dc   : > { %v809_v37 = vpop.f32.mrf.mxu2 }
 0x1dd   : > { %894 = vst [vmem:[%s2025_s6 + $0xc8] sm:$0xff] %v809_v37  ;;  %v538_v38 = vpop.f32.mrf.mxu0  ;;  %v699_v39 = vpop.f32.mrf.mxu1 }
 0x1de   : > { %v539_v40 = vadd.f32 %v1984_v0, %v538_v38  ;;  %895 = vst [vmem:[%s2025_s6 + $0xd0] sm:$0xff] %v699_v39 }
 0x1e0   : > { %746 = vmatmul.f32.gmra.mxu3 %v539_v40 }
 0x1e4   : > { %v812_v41 = vpop.f32.mrf.mxu2 }
 0x1e5   : > { %896 = vst [vmem:[%s2025_s6 + $0xd8] sm:$0xff] %v812_v41  ;;  %v541_v42 = vpop.f32.mrf.mxu0  ;;  %v702_v43 = vpop.f32.mrf.mxu1 }
 0x1e6   : > { %v542_v44 = vadd.f32 %v1984_v0, %v541_v42  ;;  %897 = vst [vmem:[%s2025_s6 + $0xe0] sm:$0xff] %v702_v43 }
 0x1e8   : > { %749 = vmatmul.f32.gmra.mxu3 %v542_v44 }
 0x1ec   : > { %v815_v45 = vpop.f32.mrf.mxu2 }
 0x1ed   : > { %898 = vst [vmem:[%s2025_s6 + $0xe8] sm:$0xff] %v815_v45  ;;  %v544_v46 = vpop.f32.mrf.mxu0  ;;  %v705_v47 = vpop.f32.mrf.mxu1 }
 0x1ee   : > { %v545_v48 = vadd.f32 %v1984_v0, %v544_v46  ;;  %899 = vst [vmem:[%s2025_s6 + $0xf0] sm:$0xff] %v705_v47 }
 0x1f0   : > { %752 = vmatmul.f32.gmra.mxu3 %v545_v48 }
 0x1f4   : > { %v818_v49 = vpop.f32.mrf.mxu2 }
 0x1f5   : > { %900 = vst [vmem:[%s2025_s6 + $0xf8] sm:$0xff] %v818_v49  ;;  %v708_v50 = vpop.f32.mrf.mxu1 }
 0x1f6   : > { %901 = vst [vmem:[%s2025_s6 + $0x100] sm:$0xff] %v708_v50 }
 0x1f8   : > { %841 = vmatmul.f32.vlgmr.msrb.gmra.mxu3 %v521_v16 }
 0x1fc   : > { %v821_v51 = vpop.f32.mrf.mxu2 }
 0x1fd   : > { %902 = vst [vmem:[%s2025_s6 + $0x108] sm:$0xff] %v821_v51  ;;  %v711_v52 = vpop.f32.mrf.mxu1 }
 0x1fe   : > { %903 = vst [vmem:[%s2025_s6 + $0x110] sm:$0xff] %v711_v52 }
 0x200   : > { %844 = vmatmul.f32.gmra.mxu3 %v524_v20 }
 0x204   : > { %v824_v53 = vpop.f32.mrf.mxu2 }
 0x205   : > { %904 = vst [vmem:[%s2025_s6 + $0x118] sm:$0xff] %v824_v53  ;;  %v714_v0 = vpop.f32.mrf.mxu1 }
 0x206   : > { %905 = vst [vmem:[%s2025_s6 + $0x120] sm:$0xff] %v714_v0 }
 0x208   : > { %847 = vmatmul.f32.gmra.mxu3 %v527_v24 }
 0x20c   : > { %v827_v54 = vpop.f32.mrf.mxu2 }
 0x20d   : > { %906 = vst [vmem:[%s2025_s6 + $0x128] sm:$0xff] %v827_v54  ;;  %v717_v55 = vpop.f32.mrf.mxu1 }
 0x20e   : > { %907 = vst [vmem:[%s2025_s6 + $0x130] sm:$0xff] %v717_v55 }
 0x210   : > { %850 = vmatmul.f32.gmra.mxu3 %v530_v28 }
 0x214   : > { %v830_v56 = vpop.f32.mrf.mxu2 }
 0x215   : > { %908 = vst [vmem:[%s2025_s6 + $0x138] sm:$0xff] %v830_v56  ;;  %v720_v57 = vpop.f32.mrf.mxu1 }
 0x216   : > { %909 = vst [vmem:[%s2025_s6 + $0x140] sm:$0xff] %v720_v57 }
 0x218   : > { %853 = vmatmul.f32.gmra.mxu3 %v533_v32 }
 0x21c   : > { %v833_v58 = vpop.f32.mrf.mxu2 }
 0x21d   : > { %910 = vst [vmem:[%s2025_s6 + $0x148] sm:$0xff] %v833_v58  ;;  %v723_v59 = vpop.f32.mrf.mxu1 }
 0x21e   : > { %911 = vst [vmem:[%s2025_s6 + $0x150] sm:$0xff] %v723_v59 }
 0x220   : > { %856 = vmatmul.f32.gmra.mxu3 %v536_v36 }
 0x224   : > { %v836_v60 = vpop.f32.mrf.mxu2 }
 0x225   : > { %912 = vst [vmem:[%s2025_s6 + $0x158] sm:$0xff] %v836_v60  ;;  %v726_v61 = vpop.f32.mrf.mxu1 }
 0x226   : > { %913 = vst [vmem:[%s2025_s6 + $0x160] sm:$0xff] %v726_v61 }
 0x228   : > { %859 = vmatmul.f32.gmra.mxu3 %v539_v40 }
 0x22c   : > { %v839_v62 = vpop.f32.mrf.mxu2 }
 0x22d   : > { %914 = vst [vmem:[%s2025_s6 + $0x168] sm:$0xff] %v839_v62 }
 0x230   : > { %862 = vmatmul.f32.gmra.mxu3 %v542_v44 }
 0x233   : > { %v729_v63 = vpop.f32.mrf.mxu3 }
 0x234   : > { %915 = vst [vmem:[%s2025_s6 + $0x170] sm:$0xff] %v729_v63 }
 0x238   : > { %865 = vmatmul.f32.gmra.mxu3 %v545_v48 }
 0x23b   : > { %v732_v1 = vpop.f32.mrf.mxu3 }
 0x23c   : > { %917 = vst [vmem:[%s2025_s6 + $0x180] sm:$0xff] %v732_v1 }
 0x243   : > { %v735_v2 = vpop.f32.mrf.mxu3 }
 0x244   : > { %919 = vst [vmem:[%s2025_s6 + $0x190] sm:$0xff] %v735_v2 }
 0x24b   : > { %v738_v3 = vpop.f32.mrf.mxu3 }
 0x24c   : > { %921 = vst [vmem:[%s2025_s6 + $0x1a0] sm:$0xff] %v738_v3 }
 0x253   : > { %v741_v4 = vpop.f32.mrf.mxu3 }
 0x254   : > { %923 = vst [vmem:[%s2025_s6 + $0x1b0] sm:$0xff] %v741_v4 }
 0x25b   : > { %v744_v5 = vpop.f32.mrf.mxu3 }
 0x25c   : > { %925 = vst [vmem:[%s2025_s6 + $0x1c0] sm:$0xff] %v744_v5 }
 0x263   : > { %v747_v6 = vpop.f32.mrf.mxu3 }
 0x264   : > { %927 = vst [vmem:[%s2025_s6 + $0x1d0] sm:$0xff] %v747_v6 }
 0x26b   : > { %v750_v7 = vpop.f32.mrf.mxu3 }
 0x26c   : > { %929 = vst [vmem:[%s2025_s6 + $0x1e0] sm:$0xff] %v750_v7 }
 0x273   : > { %v753_v8 = vpop.f32.mrf.mxu3 }
 0x274   : > { %931 = vst [vmem:[%s2025_s6 + $0x1f0] sm:$0xff] %v753_v8 }
 0x27b   : > { %v842_v9 = vpop.f32.mrf.mxu3 }
 0x27c   : > { %916 = vst [vmem:[%s2025_s6 + $0x178] sm:$0xff] %v842_v9 }
 0x283   : > { %v845_v10 = vpop.f32.mrf.mxu3 }
 0x284   : > { %918 = vst [vmem:[%s2025_s6 + $0x188] sm:$0xff] %v845_v10 }
 0x28b   : > { %v848_v11 = vpop.f32.mrf.mxu3 }
 0x28c   : > { %920 = vst [vmem:[%s2025_s6 + $0x198] sm:$0xff] %v848_v11 }
 0x293   : > { %v851_v12 = vpop.f32.mrf.mxu3 }
 0x294   : > { %922 = vst [vmem:[%s2025_s6 + $0x1a8] sm:$0xff] %v851_v12 }
 0x29b   : > { %v854_v13 = vpop.f32.mrf.mxu3 }
 0x29c   : > { %924 = vst [vmem:[%s2025_s6 + $0x1b8] sm:$0xff] %v854_v13 }
 0x2a3   : > { %v857_v14 = vpop.f32.mrf.mxu3 }
 0x2a4   : > { %926 = vst [vmem:[%s2025_s6 + $0x1c8] sm:$0xff] %v857_v14 }
 0x2ab   : > { %v860_v15 = vpop.f32.mrf.mxu3 }
 0x2ac   : > { %928 = vst [vmem:[%s2025_s6 + $0x1d8] sm:$0xff] %v860_v15 }
 0x2b3   : > { %v863_v16 = vpop.f32.mrf.mxu3 }
 0x2b4   : > { %930 = vst [vmem:[%s2025_s6 + $0x1e8] sm:$0xff] %v863_v16 }
 0x2bb   : > { %v866_v17 = vpop.f32.mrf.mxu3 }
 0x2bc   : > { %932 = vst [vmem:[%s2025_s6 + $0x1f8] sm:$0xff] %v866_v17 }
 0x2bd   : > { %1473 = shalt.err (!%p1470_p12)
}
 0x2be   : > { %s1604_s24 = smov 256   ;;  %s1605_s8 = smov 16  }
 0x2bf   : > { %1188 = dma.vmem_to_hbm [thread:$0]  (%p1803_p8), %s954_s0, 8192, %s956_s1, %s934_s15, %s1604_s24, %s1604_s24, %s1605_s8  }
 0x2c0 PF: > { %s2243_s29 = sld [smem:[#allocation23_spill]] }
 0x2c1   : > { %s2244_s9 = sld [smem:[#allocation16_spill]] }
 0x2c6   : > { %p1208_p1 = scmp.ge.s32.totalorder %s2243_s29, 2 }
 0x2c7   : > { %s970_s13 = sand.u32 1, %s2244_s9  }
 0x2c8   : > { %p1204_p3 = pnand %p1208_p1, %p1813_p2  ;;  %s971_s7 = scalar_lea.sflag [#allocation5], %s970_s13 }
 0x2ca   : > { %p1205_p5 = pneg %p1204_p3 }
 0x2cc   : > { %1543 = dma.done.wait (%p1205_p5), %s971_s7, 8192  }
 0x2cd   : > { %1545 = vsyncadd (%p1205_p5), %s971_s7, 4294959104  ;;  %s26_s28 = sadd.s32 1, %s2243_s29   ;;  %s2247_s18 = sld [smem:[#allocation17_spill]] }
 0x2ce   : > { %p2129_p9 = scmp.ge.s32.totalorder %s26_s28, 6   ;;  %s2248_s17 = sld [smem:[#allocation29_spill]] }
 0x2cf   : > { %s2249_s5 = sld [smem:[#allocation25_spill]]  ;;  %s2257_s15 = smov %s1552_s16 }
 0x2d0   : > { %s2250_s30 = sld [smem:[#allocation18_spill]]  ;;  %s2262_s21 = smov %s1576_s22 }
 0x2d1   : > { %s2251_s23 = sld [smem:[#allocation28_spill]] }
 0x2d2   : > { %s2252_s24 = sld [smem:[#allocation21_spill]]  ;;  %25 = sbr.rel (!%p2129_p9) target bundleno = 19 (0x13), region = 122 }
 0x2d3   : > { %s2253_s25 = sld [smem:[#allocation22_spill]]  ;;  %s2258_s16 = smov %s2247_s18 }
 0x2d4   : > { %s2254_s26 = sld [smem:[#allocation24_spill]]  ;;  %s2259_s18 = smov %s1564_s19 }
 0x2d5   : > { %s2255_s27 = sld [smem:[#allocation26_spill]]  ;;  %s2260_s19 = smov %s1568_s20 }
 0x2d6   : > { %s2261_s20 = smov %s2249_s5  ;;  %s2263_s22 = smov %s2250_s30 }
 0x2d7   :  { %977 = vsyncpa [#allocation4], 1 }
 0x2d8   :  { %979 = vsyncpa [#allocation4 + $0x1], 1 }
 0x2d9   :  { %980 = vsyncpa [#allocation7], 1 }
 0x2da   :  { %982 = vsyncpa [#allocation7 + $0x1], 1 }
 0x2db   :  { %983 = vsyncpa [#allocation10], 1 }
 0x2dc   :  { %985 = vsyncpa [#allocation10 + $0x1], 1 }
 0x2dd   :  { %986 = vsyncpa [#allocation5], 1 }
 0x2de   :  { %988 = vsyncpa [#allocation5 + $0x1], 1 }

</bundles_post_ra>
